<compile_context>
chip_gen: v5e
topology: v5e:2x2
jax: 0.10.0
libtpu: 0.0.40
codegen_flags: <defaults>
</compile_context>

<pallas_src>
import jax
import jax.numpy as jnp
from jax.experimental import pallas as pl
from jax.experimental.pallas import tpu as pltpu

B = 2            # batch (matches the dummy-probe batch in __init__)
IN_FLAT = 28 * 28
ENC_DIM = 64     # base_encoder output features per sample ("output_size")
HID = 128        # fc1 width
NUM_CLASSES = 10
BN_EPS = 1e-5
LANES = 128      # lane width for the packed-vector slab


def classifier_kernel(x_ref, we_ref, w1_ref, w2_ref, vec_ref, out_ref):
    # Packed small vectors (one DMA instead of five):
    #   row 0: encoder bias (64 real lanes)   row 1: bn gamma (128)
    #   row 2: bn beta (128)                  row 3: fc2 bias (10 real lanes)
    v = vec_ref[...]                                           # (8, 128) f32
    be = v[0:1, :ENC_DIM]                                      # (1, 64)
    gamma = v[1:2, :]                                          # (1, 128)
    beta = v[2:3, :]                                           # (1, 128)
    b2 = v[3:4, :NUM_CLASSES]                                  # (1, 10)

    # ---- base encoder: Linear(784 -> 64) + ReLU (bf16 MXU, f32 accumulate) ----
    h = jnp.dot(x_ref[...], we_ref[...],
                preferred_element_type=jnp.float32) + be       # (B, 64) f32
    h = jnp.maximum(h, 0.0)

    # ---- fc1: Linear(64 -> 128). Bias omitted: BN below subtracts the batch
    #      mean, so a pre-BN bias cancels exactly (training-mode BN). ----
    z = jnp.dot(h, w1_ref[...], preferred_element_type=jnp.float32)  # (B, 128)

    # ---- BatchNorm1d(128), training mode: batch stats, biased variance.
    #      gamma folded into the normalization scale. ----
    mean = jnp.mean(z, axis=0, keepdims=True)                  # (1, 128)
    var = jnp.mean((z - mean) * (z - mean), axis=0, keepdims=True)
    inv = gamma * jax.lax.rsqrt(var + BN_EPS)                  # (1, 128)
    a = jnp.maximum(z * inv + (beta - mean * inv), 0.0)        # BN + ReLU

    # ---- fc2: Linear(128 -> 10) ----
    logits = jnp.dot(a, w2_ref[...],
                     preferred_element_type=jnp.float32) + b2  # (B, 10)

    # ---- log_softmax over the class dim ----
    m = jnp.max(logits, axis=1, keepdims=True)
    shifted = logits - m
    lse = jnp.log(jnp.sum(jnp.exp(shifted), axis=1, keepdims=True))
    out_ref[...] = shifted - lse


def classifier_forward(x_nchw, params):
    # glue: NCHW -> flat [B, 784], cast to bf16 for the MXU / to halve DMA bytes
    x_flat = x_nchw.reshape(x_nchw.shape[0], -1).astype(jnp.bfloat16)

    # pack the five tiny vectors into one (8, 128) f32 slab (fc1 bias dropped)
    vec = jnp.zeros((8, LANES), jnp.float32)
    vec = vec.at[0, :ENC_DIM].set(params["be"])
    vec = vec.at[1, :].set(params["gamma"])
    vec = vec.at[2, :].set(params["beta"])
    vec = vec.at[3, :NUM_CLASSES].set(params["b2"])

    vmem = pl.BlockSpec(memory_space=pltpu.MemorySpace.VMEM)
    return pl.pallas_call(
        classifier_kernel,
        out_shape=jax.ShapeDtypeStruct((x_flat.shape[0], NUM_CLASSES), jnp.float32),
        in_specs=[vmem] * 5,
        out_specs=vmem,
    )(x_flat, params["we"], params["w1"], params["w2"], vec)


def init_params(key):
    ks = jax.random.split(key, 6)

    def lin(kw, kb, fan_in, fan_out):
        # deterministic, roughly PyTorch-Linear-scaled init
        bound = 1.0 / jnp.sqrt(fan_in)
        w = jax.random.uniform(kw, (fan_in, fan_out), jnp.float32, -bound, bound)
        b = jax.random.uniform(kb, (fan_out,), jnp.float32, -bound, bound)
        return w, b

    we, be = lin(ks[0], ks[1], IN_FLAT, ENC_DIM)     # base encoder linear
    w1, b1 = lin(ks[2], ks[3], ENC_DIM, HID)         # fc1 (b1 cancels under BN-train)
    w2, b2 = lin(ks[4], ks[5], HID, NUM_CLASSES)     # fc2
    return {
        "we": we.astype(jnp.bfloat16),               # dominant operand stored bf16
        "be": be,
        "w1": w1, "b1": b1,                          # b1 kept only for the reference
        "gamma": jnp.ones((HID,), jnp.float32),      # bn1 weight
        "beta": jnp.zeros((HID,), jnp.float32),      # bn1 bias
        "w2": w2, "b2": b2,
    }


def reference_forward(x_nchw, params):
    # Pure-JAX reference of the original module (fc1 bias INCLUDED, gamma not
    # folded) using the same bf16-quantized encoder inputs as the kernel.
    x = x_nchw.reshape(x_nchw.shape[0], -1).astype(jnp.bfloat16).astype(jnp.float32)
    we = params["we"].astype(jnp.float32)
    h = jnp.maximum(x @ we + params["be"], 0.0)
    z = h @ params["w1"] + params["b1"]
    mean = z.mean(axis=0, keepdims=True)
    var = ((z - mean) ** 2).mean(axis=0, keepdims=True)
    zb = (z - mean) * jax.lax.rsqrt(var + BN_EPS) * params["gamma"] + params["beta"]
    a = jnp.maximum(zb, 0.0)
    logits = a @ params["w2"] + params["b2"]
    return jax.nn.log_softmax(logits, axis=1)


if __name__ == "__main__":
    key = jax.random.PRNGKey(0)
    kx, kp = jax.random.split(key)
    x = jax.random.normal(kx, (B, 1, 28, 28), jnp.float32)   # NCHW, MNIST-like
    params = init_params(kp)

    out = classifier_forward(x, params)
    out = jax.block_until_ready(out)

    assert out.shape == (B, NUM_CLASSES)
    # rows of log_softmax must exp-sum to 1
    assert jnp.allclose(jnp.sum(jnp.exp(out), axis=1), 1.0, atol=1e-5)
    # kernel (bias-folded, gamma-folded) must match the un-folded reference
    ref = reference_forward(x, params)
    assert jnp.allclose(out, ref, atol=1e-3), float(jnp.max(jnp.abs(out - ref)))
    print("KERNEL_OK")
</pallas_src>

<mosaic_0001>
module attributes {stable_mosaic.version = 11 : i64} {
  func.func @classifier_kernel(%arg0: memref<2x784xbf16, #tpu.memory_space<vmem>>, %arg1: memref<784x64xbf16, #tpu.memory_space<vmem>>, %arg2: memref<64x128xf32, #tpu.memory_space<vmem>>, %arg3: memref<128x10xf32, #tpu.memory_space<vmem>>, %arg4: memref<8x128xf32, #tpu.memory_space<vmem>>, %arg5: memref<2x10xf32, #tpu.memory_space<vmem>>) attributes {dimension_semantics = [], scalar_prefetch = 0 : i64, scratch_operands = 0 : i64, tpu.core_type = #tpu.core_type<tc>} {
    %c0 = arith.constant 0 : index
    %c0_0 = arith.constant 0 : index
    %0 = vector.load %arg4[%c0, %c0_0] : memref<8x128xf32, #tpu.memory_space<vmem>>, vector<8x128xf32>
    %1 = vector.extract_strided_slice %0 {offsets = [0, 0], sizes = [1, 64], strides = [1, 1]} : vector<8x128xf32> to vector<1x64xf32>
    %2 = vector.extract_strided_slice %0 {offsets = [1, 0], sizes = [1, 128], strides = [1, 1]} : vector<8x128xf32> to vector<1x128xf32>
    %3 = vector.extract_strided_slice %0 {offsets = [2, 0], sizes = [1, 128], strides = [1, 1]} : vector<8x128xf32> to vector<1x128xf32>
    %4 = vector.extract_strided_slice %0 {offsets = [3, 0], sizes = [1, 10], strides = [1, 1]} : vector<8x128xf32> to vector<1x10xf32>
    %c0_1 = arith.constant 0 : index
    %c0_2 = arith.constant 0 : index
    %5 = vector.load %arg0[%c0_1, %c0_2] : memref<2x784xbf16, #tpu.memory_space<vmem>>, vector<2x784xbf16>
    %c0_3 = arith.constant 0 : index
    %c0_4 = arith.constant 0 : index
    %6 = vector.load %arg1[%c0_3, %c0_4] : memref<784x64xbf16, #tpu.memory_space<vmem>>, vector<784x64xbf16>
    %cst = arith.constant dense<0.000000e+00> : vector<2x64xf32>
    %7 = tpu.matmul %5, %6, %cst {dimension_numbers = #tpu.dot_dimension_numbers<[1], [0], [0], [1], [0, 0, 1, 1], [], []>} : vector<2x784xbf16>, vector<784x64xbf16>, vector<2x64xf32> -> vector<2x64xf32>
    %8 = vector.broadcast %1 : vector<1x64xf32> to vector<2x64xf32>
    %9 = arith.addf %7, %8 : vector<2x64xf32>
    %cst_5 = arith.constant 0.000000e+00 : f32
    %10 = vector.broadcast %cst_5 : f32 to vector<2x64xf32>
    %11 = arith.maximumf %9, %10 : vector<2x64xf32>
    %c0_6 = arith.constant 0 : index
    %c0_7 = arith.constant 0 : index
    %12 = vector.load %arg2[%c0_6, %c0_7] : memref<64x128xf32, #tpu.memory_space<vmem>>, vector<64x128xf32>
    %cst_8 = arith.constant dense<0.000000e+00> : vector<2x128xf32>
    %13 = tpu.matmul %11, %12, %cst_8 {dimension_numbers = #tpu.dot_dimension_numbers<[1], [0], [0], [1], [0, 0, 1, 1], [], []>} : vector<2x64xf32>, vector<64x128xf32>, vector<2x128xf32> -> vector<2x128xf32>
    %cst_9 = arith.constant dense<0.000000e+00> : vector<128xf32>
    %14 = vector.multi_reduction <add>, %13, %cst_9 [0] : vector<2x128xf32> to vector<128xf32>
    %15 = vector.shape_cast %14 : vector<128xf32> to vector<1x128xf32>
    %cst_10 = arith.constant 2.000000e+00 : f32
    %16 = vector.broadcast %cst_10 : f32 to vector<1x128xf32>
    %17 = arith.divf %15, %16 : vector<1x128xf32>
    %18 = vector.broadcast %17 : vector<1x128xf32> to vector<2x128xf32>
    %19 = arith.subf %13, %18 : vector<2x128xf32>
    %20 = vector.broadcast %17 : vector<1x128xf32> to vector<2x128xf32>
    %21 = arith.subf %13, %20 : vector<2x128xf32>
    %22 = arith.mulf %19, %21 : vector<2x128xf32>
    %cst_11 = arith.constant dense<0.000000e+00> : vector<128xf32>
    %23 = vector.multi_reduction <add>, %22, %cst_11 [0] : vector<2x128xf32> to vector<128xf32>
    %24 = vector.shape_cast %23 : vector<128xf32> to vector<1x128xf32>
    %cst_12 = arith.constant 2.000000e+00 : f32
    %25 = vector.broadcast %cst_12 : f32 to vector<1x128xf32>
    %26 = arith.divf %24, %25 : vector<1x128xf32>
    %cst_13 = arith.constant 9.99999974E-6 : f32
    %27 = vector.broadcast %cst_13 : f32 to vector<1x128xf32>
    %28 = arith.addf %26, %27 : vector<1x128xf32>
    %29 = math.rsqrt %28 : vector<1x128xf32>
    %30 = arith.mulf %2, %29 : vector<1x128xf32>
    %31 = vector.broadcast %30 : vector<1x128xf32> to vector<2x128xf32>
    %32 = arith.mulf %13, %31 : vector<2x128xf32>
    %33 = arith.mulf %17, %30 : vector<1x128xf32>
    %34 = arith.subf %3, %33 : vector<1x128xf32>
    %35 = vector.broadcast %34 : vector<1x128xf32> to vector<2x128xf32>
    %36 = arith.addf %32, %35 : vector<2x128xf32>
    %cst_14 = arith.constant 0.000000e+00 : f32
    %37 = vector.broadcast %cst_14 : f32 to vector<2x128xf32>
    %38 = arith.maximumf %36, %37 : vector<2x128xf32>
    %c0_15 = arith.constant 0 : index
    %c0_16 = arith.constant 0 : index
    %39 = vector.load %arg3[%c0_15, %c0_16] : memref<128x10xf32, #tpu.memory_space<vmem>>, vector<128x10xf32>
    %cst_17 = arith.constant dense<0.000000e+00> : vector<2x10xf32>
    %40 = tpu.matmul %38, %39, %cst_17 {dimension_numbers = #tpu.dot_dimension_numbers<[1], [0], [0], [1], [0, 0, 1, 1], [], []>} : vector<2x128xf32>, vector<128x10xf32>, vector<2x10xf32> -> vector<2x10xf32>
    %41 = vector.broadcast %4 : vector<1x10xf32> to vector<2x10xf32>
    %42 = arith.addf %40, %41 : vector<2x10xf32>
    %cst_18 = arith.constant dense<0xFF800000> : vector<2xf32>
    %43 = vector.multi_reduction <maximumf>, %42, %cst_18 [1] : vector<2x10xf32> to vector<2xf32>
    %44 = vector.shape_cast %43 : vector<2xf32> to vector<2x1xf32>
    %45 = vector.broadcast %44 : vector<2x1xf32> to vector<2x10xf32>
    %46 = arith.subf %42, %45 : vector<2x10xf32>
    %47 = math.exp %46 : vector<2x10xf32>
    %cst_19 = arith.constant dense<0.000000e+00> : vector<2xf32>
    %48 = vector.multi_reduction <add>, %47, %cst_19 [1] : vector<2x10xf32> to vector<2xf32>
    %49 = vector.shape_cast %48 : vector<2xf32> to vector<2x1xf32>
    %50 = math.log %49 : vector<2x1xf32>
    %51 = vector.broadcast %50 : vector<2x1xf32> to vector<2x10xf32>
    %52 = arith.subf %46, %51 : vector<2x10xf32>
    %c0_20 = arith.constant 0 : index
    %c0_21 = arith.constant 0 : index
    %53 = vector.load %arg5[%c0_20, %c0_21] : memref<2x10xf32, #tpu.memory_space<vmem>>, vector<2x10xf32>
    tpu.vector_store %arg5[%c0_20, %c0_21], %52 {strides = array<i32>} : memref<2x10xf32, #tpu.memory_space<vmem>>, vector<2x10xf32>,
    return
  }
}

</mosaic_0001>

<bundles_post_ra>
// kernel: tpu_custom_call.1
= control target key start
LH: loop header
LB: loop body
LE: loop exit
PB: predicated region body
PF: predicated region fallthrough
CT: control target
= control target key end

     0   :  { %s1233_s0 = inlined_call_operand.vmem [shape: bf16[2,784], index: 0, kind: input, shape index: {}]   ;;  %s1234_s1 = inlined_call_operand.vmem [shape: bf16[784,64], index: 1, kind: input, shape index: {}]   ;;  %s1235_s2 = inlined_call_operand.vmem [shape: f32[64,128], index: 2, kind: input, shape index: {}]   ;;  %s1236_s3 = inlined_call_operand.vmem [shape: f32[128,10], index: 3, kind: input, shape index: {}]   ;;  %s1237_s4 = inlined_call_operand.vmem [shape: f32[8,128], index: 4, kind: input, shape index: {}]   ;;  %s1238_s5 = inlined_call_operand.hbm [shape: f32[2,10], index: 5, kind: output, shape index: {}]  }
   0x1   :  { %v879_v0 = vld [vmem:[%s1234_s1 + $0x38] sm:$0xff]  ;;  %v878_v3 = vld [vmem:[%s1234_s1 + $0x30] sm:$0xff]  ;;  %v877_v8 = vld [vmem:[%s1234_s1 + $0x28] sm:$0xff] }
   0x2   :  { %v887_v1 = vld [vmem:[%s1234_s1 + $0x78] sm:$0xff]  ;;  %435 = vmatpush.bf16.msra.mxu0 %v879_v0  ;;  %v886_v4 = vld [vmem:[%s1234_s1 + $0x70] sm:$0xff]  ;;  %v885_v9 = vld [vmem:[%s1234_s1 + $0x68] sm:$0xff] }
   0x3   :  { %v903_v2 = vld [vmem:[%s1234_s1 + $0xf8] sm:$0xff]  ;;  %448 = vmatpush.bf16.msra.mxu1 %v887_v1  ;;  %v902_v6 = vld [vmem:[%s1234_s1 + $0xf0] sm:$0xff]  ;;  %v901_v10 = vld [vmem:[%s1234_s1 + $0xe8] sm:$0xff] }
   0x4   :  { %v895_v5 = vld [vmem:[%s1234_s1 + $0xb8] sm:$0xff]  ;;  %474 = vmatpush.bf16.msra.mxu3 %v903_v2  ;;  %v894_v7 = vld [vmem:[%s1234_s1 + $0xb0] sm:$0xff]  ;;  %v893_v11 = vld [vmem:[%s1234_s1 + $0xa8] sm:$0xff] }
   0x5   :  { %461 = vmatpush.bf16.msra.mxu2 %v895_v5  ;;  %v876_v12 = vld [vmem:[%s1234_s1 + $0x20] sm:$0xff]  ;;  %v875_v17 = vld [vmem:[%s1234_s1 + $0x18] sm:$0xff] }
   0x6   :  { %436 = vmatpush.bf16.msra.mxu0 %v878_v3  ;;  %v884_v13 = vld [vmem:[%s1234_s1 + $0x60] sm:$0xff]  ;;  %v883_v18 = vld [vmem:[%s1234_s1 + $0x58] sm:$0xff] }
   0x7   :  { %449 = vmatpush.bf16.msra.mxu1 %v886_v4  ;;  %v900_v14 = vld [vmem:[%s1234_s1 + $0xe0] sm:$0xff] }
   0x8   :  { %475 = vmatpush.bf16.msra.mxu3 %v902_v6  ;;  %v23_v15 = vld [vmem:[%s1233_s0] sm:$0x7f] }
   0x9   :  { %462 = vmatpush.bf16.msra.mxu2 %v894_v7  ;;  %v892_v16 = vld [vmem:[%s1234_s1 + $0xa0] sm:$0xff]  ;;  %124 = vst [vmem:[#allocation1] ss:$9 sm:$0xff] %v23_v15 }
   0xa   :  { %437 = vmatpush.bf16.msra.mxu0 %v877_v8 }
   0xb   :  { %450 = vmatpush.bf16.msra.mxu1 %v885_v9 }
   0xc   :  { %476 = vmatpush.bf16.msra.mxu3 %v901_v10 }
   0xd   :  { %463 = vmatpush.bf16.msra.mxu2 %v893_v11 }
   0xe   :  { %438 = vmatpush.bf16.msra.mxu0 %v876_v12 }
   0xf   :  { %451 = vmatpush.bf16.msra.mxu1 %v884_v13 }
  0x10   :  { %10 = vsyncpa [#allocation3], 0  ;;  %477 = vmatpush.bf16.msra.mxu3 %v900_v14  ;;  %v899_v19 = vld [vmem:[%s1234_s1 + $0xd8] sm:$0xff]  ;;  %v874_v21 = vld [vmem:[%s1234_s1 + $0x10] sm:$0xff]  ;;  %vm432_vm0 = vcmask 130048   ;;  %vm535_vm1 = vcmask 523264  }
  0x11   :  { %464 = vmatpush.bf16.msra.mxu2 %v892_v16  ;;  %v891_v20 = vld [vmem:[%s1234_s1 + $0x98] sm:$0xff]  ;;  %v882_v22 = vld [vmem:[%s1234_s1 + $0x50] sm:$0xff]  ;;  %v873_v25 = vld [vmem:[%s1234_s1 + $0x8] sm:$0xff]  ;;  %vm559_vm2 = vcmask 1041408   ;;  %vm644_vm7 = vcmask 74752   ;;  %s665_s10 = sshll.u32 %s1238_s5, 4  ;;  %s666_s10 = int_to_ptr.hbm [resolvable:$true] %s665_s10 }
  0x12   :  { %439 = vmatpush.bf16.msra.mxu0 %v875_v17  ;;  %v898_v23 = vld [vmem:[%s1234_s1 + $0xd0] sm:$0xff]  ;;  %v881_v26 = vld [vmem:[%s1234_s1 + $0x48] sm:$0xff]  ;;  %v872_v29 = vld [vmem:[%s1234_s1] sm:$0xff] }
  0x13   :  { %452 = vmatpush.bf16.msra.mxu1 %v883_v18  ;;  %v890_v24 = vld [vmem:[%s1234_s1 + $0x90] sm:$0xff]  ;;  %v897_v27 = vld [vmem:[%s1234_s1 + $0xc8] sm:$0xff]  ;;  %v880_v30 = vld [vmem:[%s1234_s1 + $0x40] sm:$0xff] }
  0x14   :  { %478 = vmatpush.bf16.msra.mxu3 %v899_v19  ;;  %v889_v28 = vld [vmem:[%s1234_s1 + $0x88] sm:$0xff]  ;;  %v911_v31 = vld [vmem:[%s1234_s1 + $0x138] sm:$0xff]  ;;  %v896_v33 = vld [vmem:[%s1234_s1 + $0xc0] sm:$0xff] }
  0x15   :  { %465 = vmatpush.bf16.msra.mxu2 %v891_v20  ;;  %v919_v32 = vld [vmem:[%s1234_s1 + $0x178] sm:$0xff]  ;;  %v888_v34 = vld [vmem:[%s1234_s1 + $0x80] sm:$0xff]  ;;  %v126_v36 = vld [vmem:[#allocation1 + $0x9] sm:$0xff] }
  0x16   :  { %440 = vmatpush.bf16.msra.mxu0 %v874_v21  ;;  %v125_v35 = vld [vmem:[#allocation1] sm:$0xff]  ;;  %v910_v38 = vld [vmem:[%s1234_s1 + $0x130] sm:$0xff]  ;;  %v909_v42 = vld [vmem:[%s1234_s1 + $0x128] sm:$0xff] }
  0x17   :  { %453 = vmatpush.bf16.msra.mxu1 %v882_v22  ;;  %v920_v37 = vld [vmem:[%s1234_s1 + $0x180] sm:$0xff]  ;;  %v918_v39 = vld [vmem:[%s1234_s1 + $0x170] sm:$0xff]  ;;  %v917_v43 = vld [vmem:[%s1234_s1 + $0x168] sm:$0xff] }
  0x18   :  { %479 = vmatpush.bf16.msra.mxu3 %v898_v23  ;;  %v128_v40 = vld [vmem:[#allocation1 + $0x1b] sm:$0xff]  ;;  %v127_v41 = vld [vmem:[#allocation1 + $0x12] sm:$0xff]  ;;  %v905_v51 = vld [vmem:[%s1234_s1 + $0x108] sm:$0xff] }
  0x19   :  { %466 = vmatpush.bf16.msra.mxu2 %v890_v24  ;;  %v908_v44 = vld [vmem:[%s1234_s1 + $0x120] sm:$0xff]  ;;  %v907_v46 = vld [vmem:[%s1234_s1 + $0x118] sm:$0xff]  ;;  %v906_v48 = vld [vmem:[%s1234_s1 + $0x110] sm:$0xff] }
  0x1a   :  { %441 = vmatpush.bf16.msra.mxu0 %v873_v25  ;;  %v916_v45 = vld [vmem:[%s1234_s1 + $0x160] sm:$0xff]  ;;  %v915_v47 = vld [vmem:[%s1234_s1 + $0x158] sm:$0xff]  ;;  %v914_v49 = vld [vmem:[%s1234_s1 + $0x150] sm:$0xff]  ;;  %v957_v25 = vmov 2.0  }
  0x1b   :  { %454 = vmatpush.bf16.msra.mxu1 %v881_v26  ;;  %v131_v50 = vld [vmem:[#allocation1 + $0x36] sm:$0xff]  ;;  %v913_v52 = vld [vmem:[%s1234_s1 + $0x148] sm:$0xff]  ;;  %v904_v53 = vld [vmem:[%s1234_s1 + $0x100] sm:$0xff]  ;;  %923 = vrcp.f32 %v957_v25 }
  0x1c   :  { %480 = vmatpush.bf16.msra.mxu3 %v897_v27  ;;  %v912_v54 = vld [vmem:[%s1234_s1 + $0x140] sm:$0xff]  ;;  %v130_v56 = vld [vmem:[#allocation1 + $0x2d] sm:$0xff]  ;;  %v534_v57 = vld [vmem:[%s1235_s2 + $0x38] sm:$0xff] }
  0x1d   :  { %467 = vmatpush.bf16.msra.mxu2 %v889_v28  ;;  %v129_v55 = vld [vmem:[#allocation1 + $0x24] sm:$0xff]  ;;  %v533_v58 = vld [vmem:[%s1235_s2 + $0x30] sm:$0xff]  ;;  %v530_v61 = vld [vmem:[%s1235_s2 + $0x18] sm:$0xff] }
  0x1e   :  { %442 = vmatpush.bf16.msra.mxu0 %v872_v29  ;;  %v532_v59 = vld [vmem:[%s1235_s2 + $0x28] sm:$0xff]  ;;  %v531_v60 = vld [vmem:[%s1235_s2 + $0x20] sm:$0xff]  ;;  %v529_v0 = vld [vmem:[%s1235_s2 + $0x10] sm:$0xff] }
  0x1f   :  { %455 = vmatpush.bf16.msra.mxu1 %v880_v30  ;;  %v528_v1 = vld [vmem:[%s1235_s2 + $0x8] sm:$0xff]  ;;  %v527_v2 = vld [vmem:[%s1235_s2] sm:$0xff] }
  0x20   :  { %481 = vmatpush.bf16.msra.mxu3 %v896_v33  ;;  %v1166_v5 = vld [vmem:[%s1237_s4] sm:$0xff] }
  0x21   :  { %468 = vmatpush.bf16.msra.mxu2 %v888_v34  ;;  %443 = vmatmul.bf16.vlgmr.msra.gmra.mxu0 %v125_v35  ;;  %v122_v8 = vperm.slane %v1166_v5, 0  ;;  %v924_v26 = vpop.eup %923  ;;  %v622_v34 = vld [vmem:[%s1236_s3 + $0x78] sm:$0xff] }
  0x22   :  { %487 = vmatpush.bf16.msrb.mxu0 %v911_v31  ;;  %456 = vmatmul.bf16.vlgmr.msra.gmra.mxu1 %v126_v36  ;;  %v568_v27 = vmul.f32 2.0, %v924_v26  ;;  %vm572_vm3 = vweird.f32 %v924_v26 }
  0x23   :  { %500 = vmatpush.bf16.msrb.mxu1 %v919_v32  ;;  %482 = vmatmul.bf16.vlgmr.msra.gmra.mxu3 %v128_v40 }
  0x24   :  { %520 = vmatpush.bf16.msrb.mxu3 %v920_v37  ;;  %469 = vmatmul.bf16.vlgmr.msra.gmra.mxu2 %v127_v41  ;;  %v569_v28 = vsub.f32 1.0, %v568_v27  ;;  %v621_v37 = vld [vmem:[%s1236_s3 + $0x70] sm:$0xff] }
  0x25   :  { %624 = vmatpush.msrb.mxu2 %v622_v34 }
  0x26   :  { %488 = vmatpush.bf16.msrb.mxu0 %v910_v38  ;;  %v570_v32 = vmul.f32 %v924_v26, %v569_v28 }
  0x27   :  { %501 = vmatpush.bf16.msrb.mxu1 %v918_v39  ;;  %625 = vmatpush.msrb.mxu2 %v621_v37  ;;  %v620_v39 = vld [vmem:[%s1236_s3 + $0x68] sm:$0xff] }
  0x28   :  { %547 = vmatpush.msra.mxu3 %v534_v57  ;;  %v571_v36 = vadd.f32 %v924_v26, %v570_v32  ;;  %v612_v57 = vld [vmem:[%s1236_s3 + $0x28] sm:$0xff] }
  0x29   :  { %626 = vmatpush.msrb.mxu2 %v620_v39 }
  0x2a   :  { %489 = vmatpush.bf16.msrb.mxu0 %v909_v42  ;;  %548 = vmatpush.msra.mxu3 %v533_v58  ;;  %v573_v41 = vsel %vm572_vm3, %v924_v26, %v571_v36  ;;  %v619_v42 = vld [vmem:[%s1236_s3 + $0x60] sm:$0xff] }
  0x2b   :  { %502 = vmatpush.bf16.msrb.mxu1 %v917_v43  ;;  %627 = vmatpush.msrb.mxu2 %v619_v42 }
  0x2c   :  { %549 = vmatpush.msra.mxu3 %v532_v59  ;;  %v611_v59 = vld [vmem:[%s1236_s3 + $0x20] sm:$0xff] }
  0x2e   :  { %490 = vmatpush.bf16.msrb.mxu0 %v908_v44  ;;  %550 = vmatpush.msra.mxu3 %v531_v60  ;;  %v618_v44 = vld [vmem:[%s1236_s3 + $0x58] sm:$0xff] }
  0x2f   :  { %503 = vmatpush.bf16.msrb.mxu1 %v916_v45  ;;  %628 = vmatpush.msrb.mxu2 %v618_v44 }
  0x30   :  { %551 = vmatpush.msra.mxu3 %v530_v61  ;;  %v610_v61 = vld [vmem:[%s1236_s3 + $0x18] sm:$0xff] }
  0x32   :  { %491 = vmatpush.bf16.msrb.mxu0 %v907_v46  ;;  %552 = vmatpush.msra.mxu3 %v529_v0  ;;  %v617_v46 = vld [vmem:[%s1236_s3 + $0x50] sm:$0xff] }
  0x33   :  { %504 = vmatpush.bf16.msrb.mxu1 %v915_v47  ;;  %870 = vmatmul.msk.bf16.vlgmr.msrb.gmra.mxu3 %vm432_vm0, %v131_v50  ;;  %v615_v50 = vld [vmem:[%s1236_s3 + $0x40] sm:$0xff] }
  0x34   :  { %553 = vmatpush.msra.mxu3 %v528_v1  ;;  %629 = vmatpush.msrb.mxu2 %v617_v46  ;;  %v608_v1 = vld [vmem:[%s1236_s3 + $0x8] sm:$0xff] }
  0x36   :  { %492 = vmatpush.bf16.msrb.mxu0 %v906_v48  ;;  %554 = vmatpush.msra.mxu3 %v527_v2  ;;  %v616_v48 = vld [vmem:[%s1236_s3 + $0x48] sm:$0xff]  ;;  %v607_v2 = vld [vmem:[%s1236_s3] sm:$0xff] }
  0x37   :  { %505 = vmatpush.bf16.msrb.mxu1 %v914_v49  ;;  %630 = vmatpush.msrb.mxu2 %v616_v48 }
  0x39   :  { %631 = vmatpush.msrb.mxu2 %v615_v50 }
  0x3a   :  { %493 = vmatpush.bf16.msrb.mxu0 %v905_v51 }
  0x3b   :  { %506 = vmatpush.bf16.msrb.mxu1 %v913_v52 }
  0x3e   :  { %494 = vmatpush.bf16.msrb.mxu0 %v904_v53  ;;  %v614_v53 = vld [vmem:[%s1236_s3 + $0x38] sm:$0xff] }
  0x3f   :  { %507 = vmatpush.bf16.msrb.mxu1 %v912_v54  ;;  %632 = vmatpush.msrb.mxu2 %v614_v53 }
  0x41   :  { %495 = vmatmul.bf16.vlgmr.msrb.gmra.mxu0 %v129_v55  ;;  %v613_v55 = vld [vmem:[%s1236_s3 + $0x30] sm:$0xff] }
  0x42   :  { %508 = vmatmul.bf16.vlgmr.msrb.gmra.mxu1 %v130_v56  ;;  %633 = vmatpush.msrb.mxu2 %v613_v55 }
  0x44   :  { %634 = vmatpush.msrb.mxu2 %v612_v57 }
  0x46   :  { %635 = vmatpush.msrb.mxu2 %v611_v59 }
  0x48   :  { %636 = vmatpush.msrb.mxu2 %v610_v61 }
  0x9e   :  { %v444_v62 = vpop.f32.mrf.mxu0 }
  0x9f   :  { %v457_v63 = vpop.f32.mrf.mxu1  ;;  %v445_v9 = vadd.f32 %v444_v62, %v122_v8 }
  0xa1   :  { %v458_v12 = vadd.f32 %v457_v63, %v445_v9  ;;  %v609_v63 = vld [vmem:[%s1236_s3 + $0x10] sm:$0xff]  ;;  %s958_s3 = smov [#allocation2]  }
  0xa2   :  { %637 = vmatpush.msrb.mxu2 %v609_v63  ;;  %s663_s7 = sshll.u32 %s958_s3, 4  ;;  %s664_s7 = int_to_ptr.vmem [resolvable:$true] %s663_s7 }
  0xa4   :  { %638 = vmatpush.msrb.mxu2 %v608_v1 }
  0xa6   :  { %v446_v3 = vpop.f32.mrf.mxu0  ;;  %v483_v6 = vpop.f32.mrf.mxu3  ;;  %639 = vmatpush.msrb.mxu2 %v607_v2 }
  0xa7   :  { %v459_v4 = vpop.f32.mrf.mxu1  ;;  %v470_v7 = vpop.f32.mrf.mxu2 }
  0xa8   :  { %v471_v13 = vadd.f32 %v470_v7, %v458_v12 }
  0xaa   :  { %v484_v15 = vadd.f32 %v483_v6, %v471_v13 }
  0xae   :  { %v485_v10 = vpop.f32.mrf.mxu3 }
  0xaf   :  { %v472_v11 = vpop.f32.mrf.mxu2 }
  0xb6   :  { %v522_v14 = vpop.f32.mrf.mxu3 }
  0xbe   :  { %v496_v16 = vpop.f32.mrf.mxu0  ;;  %v524_v20 = vpop.f32.mrf.mxu3 }
  0xbf   :  { %v509_v17 = vpop.f32.mrf.mxu1  ;;  %v497_v18 = vadd.f32 %v496_v16, %v484_v15 }
  0xc1   :  { %v510_v19 = vadd.f32 %v509_v17, %v497_v18 }
  0xc3   :  { %v523_v21 = vadd.f32 %v522_v14, %v510_v19 }
  0xc5   :  { %v526_v22 = vmax.f32 %v523_v21, 0.0  ;;  %v623_v21 = vperm.slane %v1166_v5, 3 }
  0xc6   :  { %v498_v23 = vpop.f32.mrf.mxu0 }
  0xc7   :  { %v511_v24 = vpop.f32.mrf.mxu1  ;;  %871 = vmatmul.msk.f32.vlgmr.msra.gmra.mxu3 %vm535_vm1, %v526_v22 }
 0x14a   :  { %v1169_v29 = vpop.f32.mrf.mxu3 }
 0x14b   :  { %v560_v30 = vsel %vm559_vm2, %v1169_v29, 0.0 }
 0x14c   :  { %v561_v31 = vrot.slane %v560_v30, 4 }
 0x14e   :  { %v562_v33 = vadd.f32 %v561_v31, %v560_v30 }
 0x150   :  { %v563_v35 = vrot.slane %v562_v33, 2 }
 0x152   :  { %v564_v38 = vadd.f32 %v563_v35, %v562_v33 }
 0x154   :  { %v565_v40 = vrot.slane %v564_v38, 1 }
 0x156   :  { %v566_v43 = vadd.f32 %v565_v40, %v564_v38 }
 0x158   :  { %v574_v45 = vmul.f32 %v573_v41, %v566_v43 }
 0x15a   :  { %v575_v47 = vsub.f32 %v1169_v29, %v574_v45 }
 0x15c   :  { %v576_v49 = vmul.f32 %v575_v47, %v575_v47 }
 0x15e   :  { %v577_v51 = vsel %vm559_vm2, %v576_v49, 0.0 }
 0x15f   :  { %v578_v52 = vrot.slane %v577_v51, 4 }
 0x161   :  { %v579_v54 = vadd.f32 %v578_v52, %v577_v51 }
 0x163   :  { %v580_v56 = vrot.slane %v579_v54, 2 }
 0x165   :  { %v581_v58 = vadd.f32 %v580_v56, %v579_v54 }
 0x167   :  { %v582_v60 = vrot.slane %v581_v58, 1 }
 0x169   :  { %v583_v62 = vadd.f32 %v582_v60, %v581_v58 }
 0x16b   :  { %v584_v0 = vmul.f32 %v583_v62, %v573_v41 }
 0x16d   :  { %v585_v3 = vadd.f32 1e-05, %v584_v0 }
 0x16f   :  { %925 = vrsqrt.f32 %v585_v3  ;;  %vm592_vm5 = vweird.f32 %v585_v3 }
 0x175   :  { %v926_v4 = vpop.eup %925 }
 0x176   :  { %v587_v6 = vmul.f32 %v926_v4, %v585_v3  ;;  %vm593_vm4 = vweird.f32 %v926_v4 }
 0x177   :  { %vm594_vm6 = vmor %vm592_vm5, %vm593_vm4 }
 0x178   :  { %v588_v7 = vmul.f32 %v926_v4, %v587_v6 }
 0x17a   :  { %v589_v8 = vmul.f32 0.5, %v588_v7 }
 0x17c   :  { %v590_v9 = vsub.f32 1.5, %v589_v8 }
 0x17e   :  { %v591_v10 = vmul.f32 %v926_v4, %v590_v9 }
 0x180   :  { %v595_v11 = vsel %vm594_vm6, %v926_v4, %v591_v10 }
 0x181   :  { %v596_v12 = vmul.f32 %v595_v11, %v1166_v5 }
 0x183   :  { %v599_v13 = vmul.f32 %v596_v12, %v574_v45  ;;  %v597_v14 = vperm.slane %v596_v12, 1 }
 0x185   :  { %v601_v15 = vrot.slane %v599_v13, 7  ;;  %v598_v17 = vmul.f32 %v597_v14, %v1169_v29 }
 0x187   :  { %v603_v16 = vsub.f32 %v1166_v5, %v601_v15 }
 0x189   :  { %v604_v18 = vperm.slane %v603_v16, 2 }
 0x18b   :  { %v605_v19 = vadd.f32 %v604_v18, %v598_v17 }
 0x18d   :  { %v606_v20 = vmax.f32 %v605_v19, 0.0 }
 0x18f   :  { %640 = vmatmul.f32.vlgmr.msrb.gmra.mxu2 %v606_v20 }
 0x212   :  { %v641_v22 = vpop.f32.mrf.mxu2 }
 0x213   :  { %v642_v23 = vadd.f32 %v641_v22, %v623_v21 }
 0x215   :  { %v645_v24 = vsel %vm644_vm7, %v642_v23, -inf }
 0x216   :  { %646 = vmax.xlane.f32.xlu0 %v645_v24 }
 0x289   :  { %v647_v25 = vpop.xlane.xlu0 %646 }
 0x28a   :  { %v648_v26 = vsub.f32 %v642_v23, %v647_v25 }
 0x28c   :  { %v649_v27 = vmul.f32 1.442695, %v648_v26 }
 0x28e   :  { %927 = vpow2.f32 %v649_v27 }
 0x294   :  { %v928_v28 = vpop.eup %927 }
 0x295   :  { %v651_v30 = vsel %vm644_vm7, %v928_v28, 0.0 }
 0x296   :  { %652 = vadd.xlane.f32.xlu0 %v651_v30 }
 0x309   :  { %v653_v29 = vpop.xlane.xlu0 %652 }
 0x30a   :  { %929 = vlog2.f32 %v653_v29 }
 0x310   :  { %v930_v31 = vpop.eup %929 }
 0x311   :  { %v655_v5 = vmul.f32 0.6931472, %v930_v31 }
 0x313   :  { %v656_v32 = vsub.f32 %v648_v26, %v655_v5 }
 0x315   :  { %657 = vst.msk [vmem:[#allocation2] sm:$0x3] %vm644_vm7, %v656_v32 }
 0x316   :  { %668 = dma.vmem_to_hbm [thread:$0]  %s664_s7, 32, %s666_s10, [#allocation3]  }
 0x317   :  { %955 = dma.done.wait [#allocation3], 32  }
 0x318   :  { %956 = vsyncadd [#allocation3], 4294967264 }
 0x319   :  { %673 = vsyncpa [#allocation3], 1 }

</bundles_post_ra>
